<compile_context>
chip_gen: v6e
topology: v6e:2x2x1
jax: 0.10.0
libtpu: 0.0.40
codegen_flags: <defaults>
</compile_context>

<pallas_src>
import numpy as np
import jax
import jax.numpy as jnp
from jax.experimental import pallas as pl
from jax.experimental.pallas import tpu as pltpu

LANE = 128        # lane width used to pad the hidden dimension
MAX_TILE = 2048   # upper bound on rows per batch tile (VMEM stays tiny at d_out lanes)
MIN_TILE = 8      # sublane granularity


def _cdiv(a, b):
    return -(-a // b)


def _round_up(n, m):
    return _cdiv(n, m) * m


def _pick_tile(batch):
    """Rows per grid step: aim for >=2 grid steps (v7x has 2 TensorCores and the
    batch axis is 'parallel'), cap the tile at MAX_TILE rows, keep it a multiple
    of 8 sublanes. For a single state this degenerates to a tiny 8-row tile."""
    half = _round_up(_cdiv(batch, 2), MIN_TILE)
    return int(min(MAX_TILE, max(MIN_TILE, half)))


def _policy_kernel(x_ref, w1_ref, b1_ref, w2_ref, b2_ref, out_ref):
    # x_ref:  [TILE, D_in]
    # w1_ref: [D_in, H_pad]     b1_ref: [1, H_pad]   (padded hidden lanes = 0)
    # w2_ref: [H_pad, D_out]    b2_ref: [1, D_out]   (no output-lane padding)
    # out_ref:[TILE, D_out]
    x = x_ref[...]

    # hidden = relu(x @ W1 + b1)  -- zero-padded hidden lanes stay exactly 0
    h = jnp.dot(x, w1_ref[...], preferred_element_type=jnp.float32) + b1_ref[...]
    h = jnp.maximum(h, 0.0)

    # logits = h @ W2 + b2        -- zero-padded W2 rows contribute exactly 0
    logp = jnp.dot(h, w2_ref[...], preferred_element_type=jnp.float32) + b2_ref[...]

    # numerically-stable softmax along the lane axis (per board state).
    m = jnp.max(logp, axis=-1, keepdims=True)
    e = jnp.exp(logp - m)
    s = jnp.sum(e, axis=-1, keepdims=True)
    out_ref[...] = e / s          # exact division (approx reciprocal removed)


def pad_params(w_hidden, b_hidden, w_out, b_out):
    """Pad only the hidden dimension up to a lane multiple; zero-pads keep
    relu/matmul exact. Output dimension is left at board_units width."""
    d_in, h = w_hidden.shape
    _, d_out = w_out.shape
    h_pad = _round_up(h, LANE)

    w1 = jnp.zeros((d_in, h_pad), jnp.float32).at[:, :h].set(
        jnp.asarray(w_hidden, jnp.float32))
    b1 = jnp.zeros((1, h_pad), jnp.float32).at[0, :h].set(
        jnp.asarray(b_hidden, jnp.float32))
    w2 = jnp.zeros((h_pad, d_out), jnp.float32).at[:h, :].set(
        jnp.asarray(w_out, jnp.float32))
    b2 = jnp.asarray(b_out, jnp.float32).reshape(1, d_out)
    return {"w1": w1, "b1": b1, "w2": w2, "b2": b2}


def flat_connect_policy_forward(x, params):
    """x: [input_units] or [B, input_units] float32.
    Returns softmax probs of shape [board_units] or [B, board_units]."""
    w1, b1, w2, b2 = params["w1"], params["b1"], params["w2"], params["b2"]
    d_in, h_pad = w1.shape
    d_out = w2.shape[1]

    single = x.ndim == 1
    if single:
        x = x[None, :]
    x = x.astype(jnp.float32)
    batch = x.shape[0]

    tile = _pick_tile(batch)
    b_pad = _round_up(batch, tile)
    if b_pad != batch:
        x = jnp.concatenate(
            [x, jnp.zeros((b_pad - batch, d_in), x.dtype)], axis=0)

    grid = (b_pad // tile,)
    out = pl.pallas_call(
        _policy_kernel,
        out_shape=jax.ShapeDtypeStruct((b_pad, d_out), jnp.float32),
        grid_spec=pltpu.PrefetchScalarGridSpec(
            num_scalar_prefetch=0,
            grid=grid,
            in_specs=[
                # activations stream with the batch tile index
                pl.BlockSpec((tile, d_in), lambda i: (i, 0)),
                # weights/biases: constant block -> VMEM-resident across tiles
                pl.BlockSpec((d_in, h_pad), lambda i: (0, 0)),
                pl.BlockSpec((1, h_pad), lambda i: (0, 0)),
                pl.BlockSpec((h_pad, d_out), lambda i: (0, 0)),
                pl.BlockSpec((1, d_out), lambda i: (0, 0)),
            ],
            # output written at d_out lanes (block last-dim == full array last-dim)
            out_specs=pl.BlockSpec((tile, d_out), lambda i: (i, 0)),
        ),
        compiler_params=pltpu.CompilerParams(
            dimension_semantics=("parallel",)),
    )(x, w1, b1, w2, b2)

    if b_pad != batch:          # only a row trim remains; no lane slice
        out = out[:batch]
    return out[0] if single else out


def init_params(key, board_size=(4, 4), H=32, double=False):
    """Deterministic PyTorch-Linear-style init: U(-1/sqrt(fan_in), 1/sqrt(fan_in)).
    Weights stored as [in_features, out_features] (transpose of torch layout)."""
    board_units = int(np.prod(board_size))
    input_units = board_units * (2 if double else 1)

    k1, k2, k3, k4 = jax.random.split(key, 4)
    bound1 = 1.0 / np.sqrt(input_units)
    bound2 = 1.0 / np.sqrt(H)

    w_hidden = jax.random.uniform(k1, (input_units, H), jnp.float32, -bound1, bound1)
    b_hidden = jax.random.uniform(k2, (H,), jnp.float32, -bound1, bound1)
    w_out = jax.random.uniform(k3, (H, board_units), jnp.float32, -bound2, bound2)
    b_out = jax.random.uniform(k4, (board_units,), jnp.float32, -bound2, bound2)
    return w_hidden, b_hidden, w_out, b_out, input_units, board_units


def reference_forward(x, w_hidden, b_hidden, w_out, b_out):
    h = jnp.maximum(x @ w_hidden + b_hidden, 0.0)
    logp = h @ w_out + b_out
    return jax.nn.softmax(logp, axis=-1)


# TODO(synk): BasePolicy's RL bookkeeping (Categorical sampling in select_action,
# finish_episode REINFORCE loss, save/load) is host-side control logic, not part
# of the forward pass, and is intentionally not implemented as a kernel.

if __name__ == "__main__":
    key = jax.random.PRNGKey(0)
    kp, kx = jax.random.split(key)

    board_size = (4, 4)   # tictactoe-like small board -> board_units = 16
    H = 32
    w_hidden, b_hidden, w_out, b_out, input_units, board_units = init_params(
        kp, board_size=board_size, H=H, double=False)
    params = pad_params(w_hidden, b_hidden, w_out, b_out)

    # Batch of flat board states (what env.flat_board() would produce).
    B = 256  # -> two grid tiles of 128 rows (>=2 steps for v7x's 2 TCs)
    x_batch = jax.random.uniform(kx, (B, input_units), jnp.float32, -1.0, 1.0)

    probs = jax.block_until_ready(flat_connect_policy_forward(x_batch, params))
    ref = reference_forward(x_batch, w_hidden, b_hidden, w_out, b_out)
    assert probs.shape == (B, board_units)
    # exact division in-kernel: tolerance only covers MXU-pass rounding diffs
    np.testing.assert_allclose(np.asarray(probs), np.asarray(ref),
                               rtol=2e-3, atol=1e-6)
    np.testing.assert_allclose(np.asarray(jnp.sum(probs, axis=-1)),
                               np.ones((B,), np.float32), atol=1e-5)

    # Single-state path (matches the torch forward's 1-D x, dim=0 softmax);
    # uses a tiny 8-row tile instead of padding to 128 rows.
    probs1 = jax.block_until_ready(
        flat_connect_policy_forward(x_batch[0], params))
    assert probs1.shape == (board_units,)
    np.testing.assert_allclose(np.asarray(probs1), np.asarray(ref[0]),
                               rtol=2e-3, atol=1e-6)

    print("KERNEL_OK")
</pallas_src>

<mosaic_0001>
module attributes {stable_mosaic.version = 11 : i64} {
  func.func @_policy_kernel(%arg0: i32, %arg1: memref<128x16xf32, #tpu.memory_space<vmem>>, %arg2: memref<16x128xf32, #tpu.memory_space<vmem>>, %arg3: memref<1x128xf32, #tpu.memory_space<vmem>>, %arg4: memref<128x16xf32, #tpu.memory_space<vmem>>, %arg5: memref<1x16xf32, #tpu.memory_space<vmem>>, %arg6: memref<128x16xf32, #tpu.memory_space<vmem>>) attributes {dimension_semantics = [#tpu.dimension_semantics<parallel>], iteration_bounds = array<i64: 2>, scalar_prefetch = 0 : i64, scratch_operands = 0 : i64, tpu.core_type = #tpu.core_type<tc>, window_params = [{transform_indices = @transform_0, window_bounds = array<i64: 128, 16>}, {pipeline_mode = #tpu.pipeline_mode<synchronous>, transform_indices = @transform_1, window_bounds = array<i64: 16, 128>}, {pipeline_mode = #tpu.pipeline_mode<synchronous>, transform_indices = @transform_2, window_bounds = array<i64: 1, 128>}, {pipeline_mode = #tpu.pipeline_mode<synchronous>, transform_indices = @transform_3, window_bounds = array<i64: 128, 16>}, {pipeline_mode = #tpu.pipeline_mode<synchronous>, transform_indices = @transform_4, window_bounds = array<i64: 1, 16>}, {transform_indices = @transform_5, window_bounds = array<i64: 128, 16>}]} {
    %c0 = arith.constant 0 : index
    %c0_0 = arith.constant 0 : index
    %0 = vector.load %arg1[%c0, %c0_0] : memref<128x16xf32, #tpu.memory_space<vmem>>, vector<128x16xf32>
    %c0_1 = arith.constant 0 : index
    %c0_2 = arith.constant 0 : index
    %1 = vector.load %arg2[%c0_1, %c0_2] : memref<16x128xf32, #tpu.memory_space<vmem>>, vector<16x128xf32>
    %cst = arith.constant dense<0.000000e+00> : vector<128x128xf32>
    %2 = tpu.matmul %0, %1, %cst {dimension_numbers = #tpu.dot_dimension_numbers<[1], [0], [0], [1], [0, 0, 1, 1], [], []>} : vector<128x16xf32>, vector<16x128xf32>, vector<128x128xf32> -> vector<128x128xf32>
    %c0_3 = arith.constant 0 : index
    %c0_4 = arith.constant 0 : index
    %3 = vector.load %arg3[%c0_3, %c0_4] : memref<1x128xf32, #tpu.memory_space<vmem>>, vector<1x128xf32>
    %4 = vector.broadcast %3 : vector<1x128xf32> to vector<128x128xf32>
    %5 = arith.addf %2, %4 : vector<128x128xf32>
    %cst_5 = arith.constant 0.000000e+00 : f32
    %6 = vector.broadcast %cst_5 : f32 to vector<128x128xf32>
    %7 = arith.maximumf %5, %6 : vector<128x128xf32>
    %c0_6 = arith.constant 0 : index
    %c0_7 = arith.constant 0 : index
    %8 = vector.load %arg4[%c0_6, %c0_7] : memref<128x16xf32, #tpu.memory_space<vmem>>, vector<128x16xf32>
    %cst_8 = arith.constant dense<0.000000e+00> : vector<128x16xf32>
    %9 = tpu.matmul %7, %8, %cst_8 {dimension_numbers = #tpu.dot_dimension_numbers<[1], [0], [0], [1], [0, 0, 1, 1], [], []>} : vector<128x128xf32>, vector<128x16xf32>, vector<128x16xf32> -> vector<128x16xf32>
    %c0_9 = arith.constant 0 : index
    %c0_10 = arith.constant 0 : index
    %10 = vector.load %arg5[%c0_9, %c0_10] : memref<1x16xf32, #tpu.memory_space<vmem>>, vector<1x16xf32>
    %11 = vector.broadcast %10 : vector<1x16xf32> to vector<128x16xf32>
    %12 = arith.addf %9, %11 : vector<128x16xf32>
    %cst_11 = arith.constant dense<0xFF800000> : vector<128xf32>
    %13 = vector.multi_reduction <maximumf>, %12, %cst_11 [1] : vector<128x16xf32> to vector<128xf32>
    %14 = vector.shape_cast %13 : vector<128xf32> to vector<128x1xf32>
    %15 = vector.broadcast %14 : vector<128x1xf32> to vector<128x16xf32>
    %16 = arith.subf %12, %15 : vector<128x16xf32>
    %17 = math.exp %16 : vector<128x16xf32>
    %cst_12 = arith.constant dense<0.000000e+00> : vector<128xf32>
    %18 = vector.multi_reduction <add>, %17, %cst_12 [1] : vector<128x16xf32> to vector<128xf32>
    %19 = vector.shape_cast %18 : vector<128xf32> to vector<128x1xf32>
    %20 = vector.broadcast %19 : vector<128x1xf32> to vector<128x16xf32>
    %21 = arith.divf %17, %20 : vector<128x16xf32>
    %c0_13 = arith.constant 0 : index
    %c0_14 = arith.constant 0 : index
    %22 = vector.load %arg6[%c0_13, %c0_14] : memref<128x16xf32, #tpu.memory_space<vmem>>, vector<128x16xf32>
    tpu.vector_store %arg6[%c0_13, %c0_14], %21 {strides = array<i32>} : memref<128x16xf32, #tpu.memory_space<vmem>>, vector<128x16xf32>,
    return
  }
  func.func @transform_0(%arg0: i32) -> (i32, i32) {
    %c0_i32 = arith.constant 0 : i32
    %c0_i32_0 = arith.constant 0 : i32
    return %arg0, %c0_i32 : i32, i32
  }
  func.func @transform_1(%arg0: i32) -> (i32, i32) {
    %c0_i32 = arith.constant 0 : i32
    %c0_i32_0 = arith.constant 0 : i32
    %c0_i32_1 = arith.constant 0 : i32
    return %c0_i32, %c0_i32_0 : i32, i32
  }
  func.func @transform_2(%arg0: i32) -> (i32, i32) {
    %c0_i32 = arith.constant 0 : i32
    %c0_i32_0 = arith.constant 0 : i32
    %c0_i32_1 = arith.constant 0 : i32
    return %c0_i32, %c0_i32_0 : i32, i32
  }
  func.func @transform_3(%arg0: i32) -> (i32, i32) {
    %c0_i32 = arith.constant 0 : i32
    %c0_i32_0 = arith.constant 0 : i32
    %c0_i32_1 = arith.constant 0 : i32
    return %c0_i32, %c0_i32_0 : i32, i32
  }
  func.func @transform_4(%arg0: i32) -> (i32, i32) {
    %c0_i32 = arith.constant 0 : i32
    %c0_i32_0 = arith.constant 0 : i32
    %c0_i32_1 = arith.constant 0 : i32
    return %c0_i32, %c0_i32_0 : i32, i32
  }
  func.func @transform_5(%arg0: i32) -> (i32, i32) {
    %c0_i32 = arith.constant 0 : i32
    %c0_i32_0 = arith.constant 0 : i32
    return %arg0, %c0_i32 : i32, i32
  }
}

</mosaic_0001>

<bundles_post_ra>
// kernel: tpu_custom_call.1
= control target key start
LH: loop header
LB: loop body
LE: loop exit
PB: predicated region body
PF: predicated region fallthrough
CT: control target
= control target key end

     0   :  { %s1184_s18 = smov 0   ;;  %s1496_s0 = inlined_call_operand.vmem [shape: f32[256,16], index: 0, kind: input, shape index: {}]   ;;  %s1497_s1 = inlined_call_operand.vmem [shape: f32[16,128], index: 1, kind: input, shape index: {}]   ;;  %s1498_s2 = inlined_call_operand.vmem [shape: f32[1,128], index: 2, kind: input, shape index: {}]   ;;  %s1499_s3 = inlined_call_operand.vmem [shape: f32[128,16], index: 3, kind: input, shape index: {}]   ;;  %s1500_s4 = inlined_call_operand.vmem [shape: f32[1,16], index: 4, kind: input, shape index: {}]   ;;  %s1501_s5 = inlined_call_operand.vmem [shape: f32[256,16], index: 5, kind: output, shape index: {}]  }
   0x1 LB: > { %s879_s19 = sadd.s32 4294967295, %s1152_s18   ;;  %p883_p0 = scmp.ge.s32.totalorder %s1152_s18, 1  ;;  %s1152_s18 = sphi %s1184_s18, %s15_s18  }
   0x2   : > { %p188_p1 = scmp.lt.s32.totalorder %s1152_s18, 3 }
   0x4   : > { %p189_p2 = pnand %p883_p0, %p188_p1 }
   0x5   : > { %s884_s24 = sshll.u32 (!%p189_p2), %s879_s19, 4 }
   0x6   : > { %192 = sbr.rel (%p189_p2) target bundleno = 760 (0x2f8), region = 40  ;;  %p217_p3 = scmp.lt.s32.totalorder (!%p189_p2), %s884_s24, 31 }
   0xb   : > { %v245_v0 = vld [vmem:[%s1497_s1 + $0x8] sm:$0xff]  ;;  %v244_v1 = vld [vmem:[%s1497_s1] sm:$0xff]  ;;  %v478_v2 = vld [vmem:[%s1499_s3 + $0x78] sm:$0xff]  ;;  %s1503_s24 = smov (!%p217_p3, %s884_s24), 31  ;;  %vm253_vm0 = vcmask 130048  }
   0xc   : > { %958 = vmatprep.subr.mxu0 %v245_v0  ;;  %1042 = vmatprep.subr.mxu1 %v478_v2  ;;  %v477_v3 = vld [vmem:[%s1499_s3 + $0x70] sm:$0xff]  ;;  %v476_v4 = vld [vmem:[%s1499_s3 + $0x68] sm:$0xff]  ;;  %s885_s6 = sshll.u32 %s1503_s24, 3  ;;  %v475_v5 = vld [vmem:[%s1499_s3 + $0x60] sm:$0xff] }
   0xd   : > { %959 = vmatpush3.msra.mxu0 %v245_v0  ;;  %1058 = vmatpush3.msra.mxu1 %v478_v2  ;;  %s1215_s9 = scalar_lea.vmem %s1496_s0, %s885_s6  ;;  %v474_v9 = vld [vmem:[%s1499_s3 + $0x58] sm:$0xff]  ;;  %v473_v12 = vld [vmem:[%s1499_s3 + $0x50] sm:$0xff]  ;;  %v472_v15 = vld [vmem:[%s1499_s3 + $0x48] sm:$0xff]  ;;  %s1443_s21 = scalar_lea.vmem %s1501_s5, %s885_s6 }
   0xe   : > { %960 = vmatprep.subr.mxu0 %v244_v1  ;;  %1043 = vmatprep.subr.mxu1 %v477_v3  ;;  %v228_v6 = vld [vmem:[%s1215_s9] sm:$0xff]  ;;  %v229_v7 = vld [vmem:[%s1215_s9 + $0x8] sm:$0xff]  ;;  %v230_v8 = vld [vmem:[%s1215_s9 + $0x10] sm:$0xff] }
   0xf   : > { %961 = vmatpush3.msra.mxu0 %v244_v1  ;;  %1059 = vmatpush3.msra.mxu1 %v477_v3  ;;  %v231_v10 = vld [vmem:[%s1215_s9 + $0x18] sm:$0xff]  ;;  %v232_v11 = vld [vmem:[%s1215_s9 + $0x20] sm:$0xff]  ;;  %v233_v13 = vld [vmem:[%s1215_s9 + $0x28] sm:$0xff] }
  0x10   : > { %986 = vmatprep.subr.mxu0 %v478_v2  ;;  %1044 = vmatprep.subr.mxu1 %v476_v4  ;;  %v234_v14 = vld [vmem:[%s1215_s9 + $0x30] sm:$0xff]  ;;  %v235_v16 = vld [vmem:[%s1215_s9 + $0x38] sm:$0xff]  ;;  %v236_v17 = vld [vmem:[%s1215_s9 + $0x40] sm:$0xff] }
  0x11   : > { %1060 = vmatpush3.msra.mxu1 %v476_v4  ;;  %962 = vmatprep.mubr.msk.f32.mxu0 %vm253_vm0, %v228_v6  ;;  %v471_v18 = vld [vmem:[%s1499_s3 + $0x40] sm:$0xff]  ;;  %v237_v19 = vld [vmem:[%s1215_s9 + $0x48] sm:$0xff]  ;;  %v470_v20 = vld [vmem:[%s1499_s3 + $0x38] sm:$0xff] }
  0x12   : > { %1045 = vmatprep.subr.mxu1 %v475_v5  ;;  %963 = vmatmul.mubr.msk.f32.vlgmr.msra.gmra.mxu0 %vm253_vm0, %v229_v7  ;;  %v238_v21 = vld [vmem:[%s1215_s9 + $0x50] sm:$0xff]  ;;  %v239_v23 = vld [vmem:[%s1215_s9 + $0x58] sm:$0xff]  ;;  %v468_v24 = vld [vmem:[%s1499_s3 + $0x28] sm:$0xff] }
  0x13   : > { %1061 = vmatpush3.msra.mxu1 %v475_v5  ;;  %965 = vmatprep.mubr.msk.f32.mxu0 %vm253_vm0, %v230_v8  ;;  %v469_v22 = vld [vmem:[%s1499_s3 + $0x30] sm:$0xff]  ;;  %v240_v25 = vld [vmem:[%s1215_s9 + $0x60] sm:$0xff]  ;;  %v241_v27 = vld [vmem:[%s1215_s9 + $0x68] sm:$0xff] }
  0x14   : > { %1046 = vmatprep.subr.mxu1 %v474_v9  ;;  %987 = vmatpush3.msra.mxu0 %v478_v2  ;;  %v467_v26 = vld [vmem:[%s1499_s3 + $0x20] sm:$0xff]  ;;  %v466_v28 = vld [vmem:[%s1499_s3 + $0x18] sm:$0xff]  ;;  %v242_v29 = vld [vmem:[%s1215_s9 + $0x70] sm:$0xff] }
  0x15   : > { %988 = vmatprep.subr.mxu0 %v477_v3  ;;  %1062 = vmatpush3.msra.mxu1 %v474_v9  ;;  %v243_v30 = vld [vmem:[%s1215_s9 + $0x78] sm:$0xff]  ;;  %v465_v31 = vld [vmem:[%s1499_s3 + $0x10] sm:$0xff]  ;;  %v464_v32 = vld [vmem:[%s1499_s3 + $0x8] sm:$0xff] }
  0x16   : > { %989 = vmatpush3.msra.mxu0 %v477_v3  ;;  %1047 = vmatprep.subr.mxu1 %v473_v12  ;;  %v463_v33 = vld [vmem:[%s1499_s3] sm:$0xff] }
  0x17   : > { %966 = vmatmul.mubr.msk.f32.gmra.mxu0 %vm253_vm0, %v231_v10  ;;  %990 = vmatprep.subr.mxu0 %v476_v4  ;;  %v888_v34 = vld [vmem:[%s1498_s2] ss:$0 sm:$0xff] }
  0x18   : > { %968 = vmatprep.mubr.msk.f32.mxu0 %vm253_vm0, %v232_v11  ;;  %991 = vmatpush3.msra.mxu0 %v476_v4 }
  0x19   : > { %992 = vmatprep.subr.mxu0 %v475_v5  ;;  %1063 = vmatpush3.msra.mxu1 %v473_v12 }
  0x1a   : > { %993 = vmatpush3.msra.mxu0 %v475_v5  ;;  %1048 = vmatprep.subr.mxu1 %v472_v15 }
  0x1b   : > { %969 = vmatmul.mubr.msk.f32.gmra.mxu0 %vm253_vm0, %v233_v13  ;;  %994 = vmatprep.subr.mxu0 %v474_v9 }
  0x1c   : > { %971 = vmatprep.mubr.msk.f32.mxu0 %vm253_vm0, %v234_v14  ;;  %995 = vmatpush3.msra.mxu0 %v474_v9 }
  0x1d   : > { %996 = vmatprep.subr.mxu0 %v473_v12  ;;  %1064 = vmatpush3.msra.mxu1 %v472_v15 }
  0x1e   : > { %997 = vmatpush3.msra.mxu0 %v473_v12  ;;  %1049 = vmatprep.subr.mxu1 %v471_v18 }
  0x1f   : > { %972 = vmatmul.mubr.msk.f32.gmra.mxu0 %vm253_vm0, %v235_v16  ;;  %998 = vmatprep.subr.mxu0 %v472_v15 }
  0x20   : > { %974 = vmatprep.mubr.msk.f32.mxu0 %vm253_vm0, %v236_v17  ;;  %999 = vmatpush3.msra.mxu0 %v472_v15 }
  0x21   : > { %1000 = vmatprep.subr.mxu0 %v471_v18  ;;  %1065 = vmatpush3.msra.mxu1 %v471_v18 }
  0x22   : > { %1001 = vmatpush3.msra.mxu0 %v471_v18  ;;  %1050 = vmatprep.subr.mxu1 %v470_v20 }
  0x23   : > { %975 = vmatmul.mubr.msk.f32.gmra.mxu0 %vm253_vm0, %v237_v19  ;;  %1002 = vmatprep.subr.mxu0 %v470_v20  ;;  %v905_v19 = vld [vmem:[%s1500_s4] ss:$0 sm:$0xff] }
  0x24   : > { %977 = vmatprep.mubr.msk.f32.mxu0 %vm253_vm0, %v238_v21  ;;  %1003 = vmatpush3.msra.mxu0 %v470_v20 }
  0x25   : > { %1004 = vmatprep.subr.mxu0 %v469_v22  ;;  %1066 = vmatpush3.msra.mxu1 %v470_v20 }
  0x26   : > { %1005 = vmatpush3.msra.mxu0 %v469_v22  ;;  %1051 = vmatprep.subr.mxu1 %v469_v22 }
  0x27   : > { %978 = vmatmul.mubr.msk.f32.gmra.mxu0 %vm253_vm0, %v239_v23  ;;  %1006 = vmatprep.subr.mxu0 %v468_v24 }
  0x28   : > { %980 = vmatprep.mubr.msk.f32.mxu0 %vm253_vm0, %v240_v25  ;;  %1007 = vmatpush3.msra.mxu0 %v468_v24 }
  0x29   : > { %1008 = vmatprep.subr.mxu0 %v467_v26  ;;  %1067 = vmatpush3.msra.mxu1 %v469_v22 }
  0x2a   : > { %1009 = vmatpush3.msra.mxu0 %v467_v26  ;;  %1052 = vmatprep.subr.mxu1 %v468_v24 }
  0x2b   : > { %981 = vmatmul.mubr.msk.f32.gmra.mxu0 %vm253_vm0, %v241_v27  ;;  %1010 = vmatprep.subr.mxu0 %v466_v28 }
  0x2c   : > { %983 = vmatprep.mubr.msk.f32.mxu0 %vm253_vm0, %v242_v29  ;;  %1011 = vmatpush3.msra.mxu0 %v466_v28 }
  0x2d   : > { %1068 = vmatpush3.msra.mxu1 %v468_v24  ;;  %1012 = vmatprep.subr.mxu0 %v465_v31 }
  0x2e   : > { %1053 = vmatprep.subr.mxu1 %v467_v26  ;;  %1013 = vmatpush3.msra.mxu0 %v465_v31 }
  0x2f   : > { %984 = vmatmul.mubr.msk.f32.gmra.mxu0 %vm253_vm0, %v243_v30  ;;  %1069 = vmatpush3.msra.mxu1 %v467_v26 }
  0x30   : > { %1054 = vmatprep.subr.mxu1 %v466_v28  ;;  %1014 = vmatprep.subr.mxu0 %v464_v32 }
  0x31   : > { %1070 = vmatpush3.msra.mxu1 %v466_v28  ;;  %1015 = vmatpush3.msra.mxu0 %v464_v32 }
  0x32   : > { %1055 = vmatprep.subr.mxu1 %v465_v31  ;;  %1016 = vmatprep.subr.mxu0 %v463_v33 }
  0x33   : > { %1071 = vmatpush3.msra.mxu1 %v465_v31  ;;  %1017 = vmatpush3.msra.mxu0 %v463_v33 }
  0x34   : > { %1056 = vmatprep.subr.mxu1 %v464_v32 }
  0x35   : > { %1072 = vmatpush3.msra.mxu1 %v464_v32 }
  0x36   : > { %1057 = vmatprep.subr.mxu1 %v463_v33 }
  0x37   : > { %1073 = vmatpush3.msra.mxu1 %v463_v33 }
  0xd2   : > { %v964_v35 = vpop.f32.mrf.mxu0 }
  0xd3   : > { %v374_v36 = vadd.f32 %v964_v35, %v888_v34 }
  0xd4   : > { %v368_v37 = vpop.f32.mrf.mxu0 }
  0xd5   : > { %v369_v38 = vadd.f32 %v888_v34, %v368_v37  ;;  %v448_v41 = vmax.f32 %v374_v36, 0.0 }
  0xd7   : > { %v967_v39 = vpop.f32.mrf.mxu0  ;;  %v447_v40 = vmax.f32 %v369_v38, 0.0 }
  0xd8   : > { %v384_v42 = vadd.f32 %v967_v39, %v888_v34 }
  0xd9   : > { %v378_v43 = vpop.f32.mrf.mxu0  ;;  %1018 = vmatprep.mubr.f32.mxu0 %v447_v40 }
  0xda   : > { %v379_v44 = vadd.f32 %v888_v34, %v378_v43  ;;  %1019 = vmatmul.mubr.f32.vlgmr.msra.gmra.mxu0 %v448_v41  ;;  %v450_v48 = vmax.f32 %v384_v42, 0.0 }
  0xdb   : > { %v970_v45 = vpop.f32.mrf.mxu0 }
  0xdc   : > { %v449_v46 = vmax.f32 %v379_v44, 0.0  ;;  %v394_v47 = vadd.f32 %v970_v45, %v888_v34 }
  0xdd   : > { %v388_v49 = vpop.f32.mrf.mxu0 }
  0xde   : > { %v389_v50 = vadd.f32 %v888_v34, %v388_v49  ;;  %1021 = vmatprep.mubr.f32.mxu0 %v449_v46  ;;  %v452_v51 = vmax.f32 %v394_v47, 0.0 }
  0xdf   : > { %v973_v52 = vpop.f32.mrf.mxu0  ;;  %1022 = vmatmul.mubr.f32.gmra.mxu0 %v450_v48 }
  0xe0   : > { %v451_v53 = vmax.f32 %v389_v50, 0.0  ;;  %v404_v54 = vadd.f32 %v973_v52, %v888_v34 }
  0xe1   : > { %v398_v55 = vpop.f32.mrf.mxu0 }
  0xe2   : > { %1024 = vmatprep.mubr.f32.mxu0 %v451_v53  ;;  %v399_v56 = vadd.f32 %v888_v34, %v398_v55  ;;  %v454_v57 = vmax.f32 %v404_v54, 0.0 }
  0xe3   : > { %v976_v58 = vpop.f32.mrf.mxu0  ;;  %1025 = vmatmul.mubr.f32.gmra.mxu0 %v452_v51 }
  0xe4   : > { %v414_v59 = vadd.f32 %v976_v58, %v888_v34  ;;  %v453_v60 = vmax.f32 %v399_v56, 0.0 }
  0xe5   : > { %v408_v61 = vpop.f32.mrf.mxu0 }
  0xe6   : > { %v409_v62 = vadd.f32 %v888_v34, %v408_v61  ;;  %1027 = vmatprep.mubr.f32.mxu1 %v453_v60  ;;  %v456_v63 = vmax.f32 %v414_v59, 0.0 }
  0xe7   : > { %v979_v0 = vpop.f32.mrf.mxu0  ;;  %1028 = vmatmul.mubr.f32.vlgmr.msra.gmra.mxu1 %v454_v57 }
  0xe8   : > { %v455_v1 = vmax.f32 %v409_v62, 0.0  ;;  %v424_v2 = vadd.f32 %v979_v0, %v888_v34 }
  0xe9   : > { %v418_v3 = vpop.f32.mrf.mxu0 }
  0xea   : > { %v419_v4 = vadd.f32 %v888_v34, %v418_v3  ;;  %1030 = vmatprep.mubr.f32.mxu1 %v455_v1  ;;  %v458_v5 = vmax.f32 %v424_v2, 0.0 }
  0xeb   : > { %v982_v6 = vpop.f32.mrf.mxu0  ;;  %1031 = vmatmul.mubr.f32.gmra.mxu1 %v456_v63 }
  0xec   : > { %v457_v7 = vmax.f32 %v419_v4, 0.0  ;;  %v434_v8 = vadd.f32 %v982_v6, %v888_v34 }
  0xed   : > { %v428_v9 = vpop.f32.mrf.mxu0 }
  0xee   : > { %v429_v10 = vadd.f32 %v888_v34, %v428_v9  ;;  %1033 = vmatprep.mubr.f32.mxu1 %v457_v7  ;;  %v460_v11 = vmax.f32 %v434_v8, 0.0 }
  0xef   : > { %v985_v12 = vpop.f32.mrf.mxu0  ;;  %1034 = vmatmul.mubr.f32.gmra.mxu1 %v458_v5 }
  0xf0   : > { %v459_v13 = vmax.f32 %v429_v10, 0.0  ;;  %v444_v14 = vadd.f32 %v985_v12, %v888_v34 }
  0xf1   : > { %v438_v15 = vpop.f32.mrf.mxu0 }
  0xf2   : > { %v439_v16 = vadd.f32 %v888_v34, %v438_v15  ;;  %1036 = vmatprep.mubr.f32.mxu1 %v459_v13  ;;  %v462_v17 = vmax.f32 %v444_v14, 0.0 }
  0xf3   : > { %1037 = vmatmul.mubr.f32.gmra.mxu1 %v460_v11 }
  0xf4   : > { %v461_v18 = vmax.f32 %v439_v16, 0.0 }
  0xf6   : > { %1039 = vmatprep.mubr.f32.mxu1 %v461_v18 }
  0xf7   : > { %1040 = vmatmul.mubr.f32.gmra.mxu1 %v462_v17 }
 0x19a   : > { %v1020_v20 = vpop.f32.mrf.mxu0 }
 0x19b   : > { %v1294_v21 = vadd.f32 %v1020_v20, %v905_v19 }
 0x19c   : > { %v552_v22 = vpop.f32.mrf.mxu0 }
 0x19d   : > { %v1296_v23 = vadd.f32 %v905_v19, %v552_v22  ;;  %v634_v24 = vsel %vm253_vm0, %v1294_v21, -inf }
 0x19e   : > { %635 = vmax.xlane.f32.xlu0 %v634_v24 }
 0x19f   : > { %v1023_v25 = vpop.f32.mrf.mxu0  ;;  %v631_v30 = vsel %vm253_vm0, %v1296_v23, -inf }
 0x1a0   : > { %v1300_v26 = vadd.f32 %v1023_v25, %v905_v19 }
 0x1a1   : > { %v562_v27 = vpop.f32.mrf.mxu0 }
 0x1a2   : > { %v1302_v28 = vadd.f32 %v905_v19, %v562_v27  ;;  %v640_v29 = vsel %vm253_vm0, %v1300_v26, -inf  ;;  %632 = vmax.xlane.f32.xlu0 %v631_v30 }
 0x1a3   : > { %641 = vmax.xlane.f32.xlu1 %v640_v29  ;;  %v1026_v31 = vpop.f32.mrf.mxu0 }
 0x1a4   : > { %v1308_v33 = vadd.f32 %v1026_v31, %v905_v19  ;;  %v637_v35 = vsel %vm253_vm0, %v1302_v28, -inf }
 0x1a5   : > { %v572_v32 = vpop.f32.mrf.mxu0 }
 0x1a6   : > { %v1310_v34 = vadd.f32 %v905_v19, %v572_v32  ;;  %v646_v41 = vsel %vm253_vm0, %v1308_v33, -inf }
 0x1a7   : > { %v1029_v36 = vpop.f32.mrf.mxu1  ;;  %638 = vmax.xlane.f32.xlu1 %v637_v35 }
 0x1a8   : > { %v643_v37 = vsel %vm253_vm0, %v1310_v34, -inf  ;;  %v1316_v39 = vadd.f32 %v1029_v36, %v905_v19 }
 0x1a9   : > { %v582_v38 = vpop.f32.mrf.mxu1  ;;  %644 = vmax.xlane.f32.xlu0 %v643_v37 }
 0x1aa   : > { %v1318_v40 = vadd.f32 %v905_v19, %v582_v38  ;;  %v652_v47 = vsel %vm253_vm0, %v1316_v39, -inf }
 0x1ab   : > { %v1032_v42 = vpop.f32.mrf.mxu1  ;;  %647 = vmax.xlane.f32.xlu1 %v646_v41 }
 0x1ac   : > { %v649_v43 = vsel %vm253_vm0, %v1318_v40, -inf  ;;  %v1324_v45 = vadd.f32 %v1032_v42, %v905_v19 }
 0x1ad   : > { %v592_v44 = vpop.f32.mrf.mxu1  ;;  %650 = vmax.xlane.f32.xlu0 %v649_v43 }
 0x1ae   : > { %v1326_v46 = vadd.f32 %v905_v19, %v592_v44  ;;  %v658_v53 = vsel %vm253_vm0, %v1324_v45, -inf }
 0x1af   : > { %v1035_v48 = vpop.f32.mrf.mxu1  ;;  %653 = vmax.xlane.f32.xlu1 %v652_v47 }
 0x1b0   : > { %v655_v49 = vsel %vm253_vm0, %v1326_v46, -inf  ;;  %v1332_v51 = vadd.f32 %v1035_v48, %v905_v19 }
 0x1b1   : > { %v602_v50 = vpop.f32.mrf.mxu1  ;;  %656 = vmax.xlane.f32.xlu0 %v655_v49 }
 0x1b2   : > { %v1334_v52 = vadd.f32 %v905_v19, %v602_v50  ;;  %v664_v59 = vsel %vm253_vm0, %v1332_v51, -inf }
 0x1b3   : > { %v1038_v54 = vpop.f32.mrf.mxu1  ;;  %659 = vmax.xlane.f32.xlu1 %v658_v53 }
 0x1b4   : > { %v661_v55 = vsel %vm253_vm0, %v1334_v52, -inf  ;;  %v1340_v57 = vadd.f32 %v1038_v54, %v905_v19 }
 0x1b5   : > { %v612_v56 = vpop.f32.mrf.mxu1  ;;  %662 = vmax.xlane.f32.xlu0 %v661_v55 }
 0x1b6   : > { %v1342_v58 = vadd.f32 %v905_v19, %v612_v56  ;;  %v670_v1 = vsel %vm253_vm0, %v1340_v57, -inf }
 0x1b7   : > { %v1041_v60 = vpop.f32.mrf.mxu1  ;;  %665 = vmax.xlane.f32.xlu1 %v664_v59 }
 0x1b8   : > { %v667_v61 = vsel %vm253_vm0, %v1342_v58, -inf  ;;  %v1348_v63 = vadd.f32 %v1041_v60, %v905_v19 }
 0x1b9   : > { %v622_v62 = vpop.f32.mrf.mxu1  ;;  %668 = vmax.xlane.f32.xlu0 %v667_v61 }
 0x1ba   : > { %v1350_v0 = vadd.f32 %v905_v19, %v622_v62  ;;  %v676_v3 = vsel %vm253_vm0, %v1348_v63, -inf }
 0x1bb   : > { %671 = vmax.xlane.f32.xlu1 %v670_v1 }
 0x1bc   : > { %v673_v2 = vsel %vm253_vm0, %v1350_v0, -inf }
 0x1bd   : > { %674 = vmax.xlane.f32.xlu0 %v673_v2 }
 0x1bf   : > { %677 = vmax.xlane.f32.xlu1 %v676_v3 }
 0x227   : > { %v636_v4 = vpop.xlane.xlu0 %635 }
 0x228   : > { %v680_v5 = vsub.f32 %v1294_v21, %v636_v4 }
 0x22a   : > { %v697_v6 = vmul.f32 1.442695, %v680_v5 }
 0x22b   : > { %v633_v8 = vpop.xlane.xlu0 %632 }
 0x22c   : > { %v642_v7 = vpop.xlane.xlu1 %641  ;;  %1082 = vpow2.f32 %v697_v6  ;;  %v679_v10 = vsub.f32 %v1296_v23, %v633_v8 }
 0x22d   : > { %v682_v9 = vsub.f32 %v1300_v26, %v642_v7 }
 0x22e   : > { %v695_v12 = vmul.f32 1.442695, %v679_v10 }
 0x22f   : > { %v701_v11 = vmul.f32 1.442695, %v682_v9 }
 0x230   : > { %v639_v13 = vpop.xlane.xlu1 %638 }
 0x231   : > { %1084 = vpow2.f32 %v701_v11  ;;  %v681_v14 = vsub.f32 %v1302_v28, %v639_v13 }
 0x232   : > { %1086 = vpow2.f32 %v695_v12  ;;  %v645_v15 = vpop.xlane.xlu0 %644 }
 0x233   : > { %v699_v16 = vmul.f32 1.442695, %v681_v14  ;;  %v683_v17 = vsub.f32 %v1310_v34, %v645_v15 }
 0x234   : > { %v648_v18 = vpop.xlane.xlu1 %647 }
 0x235   : > { %1088 = vpow2.f32 %v699_v16  ;;  %v703_v19 = vmul.f32 1.442695, %v683_v17  ;;  %v684_v20 = vsub.f32 %v1308_v33, %v648_v18 }
 0x236   : > { %v651_v21 = vpop.xlane.xlu0 %650 }
 0x237   : > { %v705_v22 = vmul.f32 1.442695, %v684_v20  ;;  %v685_v23 = vsub.f32 %v1318_v40, %v651_v21  ;;  %1090 = vpow2.f32 %v703_v19 }
 0x238   : > { %v654_v24 = vpop.xlane.xlu1 %653 }
 0x239   : > { %1092 = vpow2.f32 %v705_v22  ;;  %v707_v25 = vmul.f32 1.442695, %v685_v23  ;;  %v686_v26 = vsub.f32 %v1316_v39, %v654_v24  ;;  %v1366_v27 = vpop.eup %1082 }
 0x23a   : > { %v657_v28 = vpop.xlane.xlu0 %656  ;;  %v730_v31 = vsel %vm253_vm0, %v1366_v27, 0.0 }
 0x23b   : > { %v709_v29 = vmul.f32 1.442695, %v686_v26  ;;  %v687_v30 = vsub.f32 %v1326_v46, %v657_v28  ;;  %1094 = vpow2.f32 %v707_v25  ;;  %731 = vadd.xlane.f32.xlu1 %v730_v31 }
 0x23c   : > { %v660_v32 = vpop.xlane.xlu1 %659 }
 0x23d   : > { %1096 = vpow2.f32 %v709_v29  ;;  %v711_v33 = vmul.f32 1.442695, %v687_v30  ;;  %v688_v34 = vsub.f32 %v1324_v45, %v660_v32 }
 0x23e   : > { %v1372_v35 = vpop.eup %1084  ;;  %v663_v36 = vpop.xlane.xlu0 %662 }
 0x23f   : > { %v1374_v37 = vpop.eup %1086  ;;  %v713_v38 = vmul.f32 1.442695, %v688_v34  ;;  %v689_v39 = vsub.f32 %v1334_v52, %v663_v36  ;;  %v736_v40 = vsel %vm253_vm0, %v1372_v35, 0.0  ;;  %1098 = vpow2.f32 %v711_v33 }
 0x240   : > { %737 = vadd.xlane.f32.xlu1 %v736_v40  ;;  %v666_v41 = vpop.xlane.xlu1 %665  ;;  %v727_v42 = vsel %vm253_vm0, %v1374_v37, 0.0 }
 0x241   : > { %1100 = vpow2.f32 %v713_v38  ;;  %v715_v43 = vmul.f32 1.442695, %v689_v39  ;;  %v690_v44 = vsub.f32 %v1332_v51, %v666_v41  ;;  %728 = vadd.xlane.f32.xlu0 %v727_v42 }
 0x242   : > { %v1382_v45 = vpop.eup %1088  ;;  %v669_v46 = vpop.xlane.xlu0 %668 }
 0x243   : > { %v717_v47 = vmul.f32 1.442695, %v690_v44  ;;  %v691_v48 = vsub.f32 %v1342_v58, %v669_v46  ;;  %v733_v49 = vsel %vm253_vm0, %v1382_v45, 0.0  ;;  %1102 = vpow2.f32 %v715_v43 }
 0x244   : > { %v672_v50 = vpop.xlane.xlu1 %671  ;;  %v1387_v52 = vpop.eup %1090 }
 0x245   : > { %1104 = vpow2.f32 %v717_v47  ;;  %v719_v53 = vmul.f32 1.442695, %v691_v48  ;;  %v692_v54 = vsub.f32 %v1340_v57, %v672_v50  ;;  %734 = vadd.xlane.f32.xlu0 %v733_v49  ;;  %v739_v61 = vsel %vm253_vm0, %v1387_v52, 0.0 }
 0x246   : > { %v1390_v51 = vpop.eup %1092  ;;  %v675_v55 = vpop.xlane.xlu0 %674 }
 0x247   : > { %v721_v56 = vmul.f32 1.442695, %v692_v54  ;;  %v693_v59 = vsub.f32 %v1350_v0, %v675_v55  ;;  %v742_v58 = vsel %vm253_vm0, %v1390_v51, 0.0  ;;  %1106 = vpow2.f32 %v719_v53 }
 0x248   : > { %743 = vadd.xlane.f32.xlu1 %v742_v58  ;;  %v678_v60 = vpop.xlane.xlu1 %677  ;;  %v1397_v62 = vpop.eup %1094 }
 0x249   : > { %1108 = vpow2.f32 %v721_v56  ;;  %v723_v57 = vmul.f32 1.442695, %v693_v59  ;;  %v694_v1 = vsub.f32 %v1348_v63, %v678_v60  ;;  %740 = vadd.xlane.f32.xlu0 %v739_v61  ;;  %v745_v4 = vsel %vm253_vm0, %v1397_v62, 0.0 }
 0x24a   : > { %v1400_v2 = vpop.eup %1096 }
 0x24b   : > { %v725_v3 = vmul.f32 1.442695, %v694_v1  ;;  %v748_v0 = vsel %vm253_vm0, %v1400_v2, 0.0  ;;  %1110 = vpow2.f32 %v723_v57 }
 0x24c   : > { %749 = vadd.xlane.f32.xlu1 %v748_v0  ;;  %v1406_v5 = vpop.eup %1098 }
 0x24d   : > { %1112 = vpow2.f32 %v725_v3  ;;  %746 = vadd.xlane.f32.xlu0 %v745_v4  ;;  %v751_v7 = vsel %vm253_vm0, %v1406_v5, 0.0 }
 0x24e   : > { %v1408_v6 = vpop.eup %1100 }
 0x24f   : > { %v754_v63 = vsel %vm253_vm0, %v1408_v6, 0.0 }
 0x250   : > { %755 = vadd.xlane.f32.xlu1 %v754_v63  ;;  %v1414_v8 = vpop.eup %1102 }
 0x251   : > { %752 = vadd.xlane.f32.xlu0 %v751_v7  ;;  %v757_v11 = vsel %vm253_vm0, %v1414_v8, 0.0 }
 0x252   : > { %v1416_v9 = vpop.eup %1104 }
 0x253   : > { %v760_v10 = vsel %vm253_vm0, %v1416_v9, 0.0 }
 0x254   : > { %761 = vadd.xlane.f32.xlu1 %v760_v10  ;;  %v1422_v12 = vpop.eup %1106 }
 0x255   : > { %758 = vadd.xlane.f32.xlu0 %v757_v11  ;;  %v763_v15 = vsel %vm253_vm0, %v1422_v12, 0.0 }
 0x256   : > { %v1424_v13 = vpop.eup %1108 }
 0x257   : > { %v766_v14 = vsel %vm253_vm0, %v1424_v13, 0.0 }
 0x258   : > { %767 = vadd.xlane.f32.xlu1 %v766_v14  ;;  %v1430_v16 = vpop.eup %1110 }
 0x259   : > { %764 = vadd.xlane.f32.xlu0 %v763_v15  ;;  %v769_v19 = vsel %vm253_vm0, %v1430_v16, 0.0 }
 0x25a   : > { %v1432_v17 = vpop.eup %1112 }
 0x25b   : > { %v772_v18 = vsel %vm253_vm0, %v1432_v17, 0.0 }
 0x25c   : > { %773 = vadd.xlane.f32.xlu1 %v772_v18 }
 0x25d   : > { %770 = vadd.xlane.f32.xlu0 %v769_v19 }
 0x2c4   : > { %v732_v20 = vpop.xlane.xlu1 %731 }
 0x2c5   : > { %1114 = vrcp.f32 %v732_v20 }
 0x2c9   : > { %v738_v21 = vpop.xlane.xlu1 %737 }
 0x2ca   : > { %1116 = vrcp.f32 %v738_v21  ;;  %v729_v22 = vpop.xlane.xlu0 %728 }
 0x2cb   : > { %1118 = vrcp.f32 %v729_v22 }
 0x2ce   : > { %v735_v23 = vpop.xlane.xlu0 %734 }
 0x2cf   : > { %1120 = vrcp.f32 %v735_v23 }
 0x2d1   : > { %v744_v24 = vpop.xlane.xlu1 %743 }
 0x2d2   : > { %1122 = vrcp.f32 %v744_v24  ;;  %v741_v25 = vpop.xlane.xlu0 %740  ;;  %v1115_v26 = vpop.eup %1114 }
 0x2d3   : > { %1124 = vrcp.f32 %v741_v25  ;;  %v778_v28 = vmul.f32 %v1115_v26, %v1366_v27 }
 0x2d5   : > { %v750_v29 = vpop.xlane.xlu1 %749  ;;  %808 = vst.msk [vmem:[%s1443_s21 + $0x8] sm:$0xff] %vm253_vm0, %v778_v28 }
 0x2d6   : > { %1126 = vrcp.f32 %v750_v29  ;;  %v747_v30 = vpop.xlane.xlu0 %746 }
 0x2d7   : > { %v1117_v31 = vpop.eup %1116  ;;  %1128 = vrcp.f32 %v747_v30 }
 0x2d8   : > { %v1119_v32 = vpop.eup %1118  ;;  %v782_v33 = vmul.f32 %v1117_v31, %v1372_v35 }
 0x2d9   : > { %v776_v34 = vmul.f32 %v1119_v32, %v1374_v37  ;;  %v756_v36 = vpop.xlane.xlu1 %755 }
 0x2da   : > { %810 = vst.msk [vmem:[%s1443_s21 + $0x18] sm:$0xff] %vm253_vm0, %v782_v33  ;;  %1130 = vrcp.f32 %v756_v36  ;;  %v753_v38 = vpop.xlane.xlu0 %752 }
 0x2db   : > { %807 = vst.msk [vmem:[%s1443_s21] sm:$0xff] %vm253_vm0, %v776_v34  ;;  %1132 = vrcp.f32 %v753_v38 }
 0x2dc   : > { %v1121_v27 = vpop.eup %1120 }
 0x2dd   : > { %v780_v39 = vmul.f32 %v1121_v27, %v1382_v45  ;;  %v762_v40 = vpop.xlane.xlu1 %761 }
 0x2de   : > { %1134 = vrcp.f32 %v762_v40  ;;  %v759_v41 = vpop.xlane.xlu0 %758 }
 0x2df   : > { %v1123_v42 = vpop.eup %1122  ;;  %809 = vst.msk [vmem:[%s1443_s21 + $0x10] sm:$0xff] %vm253_vm0, %v780_v39  ;;  %1136 = vrcp.f32 %v759_v41 }
 0x2e0   : > { %v1125_v35 = vpop.eup %1124  ;;  %v786_v37 = vmul.f32 %v1123_v42, %v1390_v51 }
 0x2e1   : > { %v784_v43 = vmul.f32 %v1125_v35, %v1387_v52  ;;  %v768_v44 = vpop.xlane.xlu1 %767 }
 0x2e2   : > { %812 = vst.msk [vmem:[%s1443_s21 + $0x28] sm:$0xff] %vm253_vm0, %v786_v37  ;;  %1138 = vrcp.f32 %v768_v44  ;;  %v765_v46 = vpop.xlane.xlu0 %764 }
 0x2e3   : > { %v1127_v45 = vpop.eup %1126  ;;  %811 = vst.msk [vmem:[%s1443_s21 + $0x20] sm:$0xff] %vm253_vm0, %v784_v43  ;;  %1140 = vrcp.f32 %v765_v46 }
 0x2e4   : > { %v1129_v47 = vpop.eup %1128  ;;  %v790_v48 = vmul.f32 %v1127_v45, %v1400_v2 }
 0x2e5   : > { %v788_v49 = vmul.f32 %v1129_v47, %v1397_v62  ;;  %v774_v50 = vpop.xlane.xlu1 %773 }
 0x2e6   : > { %814 = vst.msk [vmem:[%s1443_s21 + $0x38] sm:$0xff] %vm253_vm0, %v790_v48  ;;  %1142 = vrcp.f32 %v774_v50  ;;  %v771_v52 = vpop.xlane.xlu0 %770 }
 0x2e7   : > { %v1131_v53 = vpop.eup %1130  ;;  %813 = vst.msk [vmem:[%s1443_s21 + $0x30] sm:$0xff] %vm253_vm0, %v788_v49  ;;  %1144 = vrcp.f32 %v771_v52 }
 0x2e8   : > { %v1133_v54 = vpop.eup %1132  ;;  %v794_v51 = vmul.f32 %v1131_v53, %v1408_v6 }
 0x2e9   : > { %v792_v55 = vmul.f32 %v1133_v54, %v1406_v5 }
 0x2ea   : > { %816 = vst.msk [vmem:[%s1443_s21 + $0x48] sm:$0xff] %vm253_vm0, %v794_v51 }
 0x2eb   : > { %v1135_v56 = vpop.eup %1134  ;;  %815 = vst.msk [vmem:[%s1443_s21 + $0x40] sm:$0xff] %vm253_vm0, %v792_v55 }
 0x2ec   : > { %v1137_v59 = vpop.eup %1136  ;;  %v798_v58 = vmul.f32 %v1135_v56, %v1416_v9 }
 0x2ed   : > { %v796_v60 = vmul.f32 %v1137_v59, %v1414_v8 }
 0x2ee   : > { %818 = vst.msk [vmem:[%s1443_s21 + $0x58] sm:$0xff] %vm253_vm0, %v798_v58 }
 0x2ef   : > { %v1139_v61 = vpop.eup %1138  ;;  %817 = vst.msk [vmem:[%s1443_s21 + $0x50] sm:$0xff] %vm253_vm0, %v796_v60 }
 0x2f0   : > { %v1141_v62 = vpop.eup %1140  ;;  %v802_v57 = vmul.f32 %v1139_v61, %v1424_v13 }
 0x2f1   : > { %v800_v1 = vmul.f32 %v1141_v62, %v1422_v12 }
 0x2f2   : > { %820 = vst.msk [vmem:[%s1443_s21 + $0x68] sm:$0xff] %vm253_vm0, %v802_v57 }
 0x2f3   : > { %v1143_v2 = vpop.eup %1142  ;;  %819 = vst.msk [vmem:[%s1443_s21 + $0x60] sm:$0xff] %vm253_vm0, %v800_v1 }
 0x2f4   : > { %v1145_v3 = vpop.eup %1144  ;;  %v806_v0 = vmul.f32 %v1143_v2, %v1432_v17 }
 0x2f5   : > { %v804_v4 = vmul.f32 %v1145_v3, %v1430_v16 }
 0x2f6   : > { %822 = vst.msk [vmem:[%s1443_s21 + $0x78] sm:$0xff] %vm253_vm0, %v806_v0 }
 0x2f7   : > { %821 = vst.msk [vmem:[%s1443_s21 + $0x70] sm:$0xff] %vm253_vm0, %v804_v4 }
 0x2f8 PF: > { %s15_s18 = sadd.s32 1, %s1152_s18  }
 0x2f9   : > { %p12_p4 = scmp.ge.s32.totalorder %s15_s18, 4  }
 0x2fb   :  { %14 = sbr.rel (!%p12_p4) target bundleno = 1 (0x1), region = 70 }

</bundles_post_ra>
